<compile_context>
chip_gen: v7x
topology: tpu7x:2x2x1
jax: 0.10.0
libtpu: 0.0.40
codegen_flags: <defaults>
</compile_context>

<pallas_src>
import functools

import jax
import jax.numpy as jnp
from jax import lax
from jax.experimental import pallas as pl
from jax.experimental.pallas import tpu as pltpu


def _round_up(n, m):
    return -(-n // m) * m


def _tile_bytes(sublane, lane, itemsize=4):
    """f32 VMEM footprint of a (sublane, lane) tile after (8, 128) padding."""
    return itemsize * _round_up(max(sublane, 1), 8) * _round_up(max(lane, 1), 128)


def tpa_kernel(x_ref, pat_ref, w_ref, b_ref, out_ref, attn_ref, *,
               s_valid, attn_transposed):
    # x_ref:    (TB, S, H)  batch block of lstm outputs (S padded to 8k)
    # pat_ref:  (P, H)      pattern parameter
    # w_ref:    (O, P)      linear weight (O = 62)
    # b_ref:    (O, 1)      linear bias as a column (broadcasts over H)
    # out_ref:  (TB, O, H)
    # attn_ref: (TB, P, S) if attn_transposed else (TB, S, P)
    TB, S, H = x_ref.shape
    P = pat_ref.shape[0]
    O = w_ref.shape[0]

    x = x_ref[...]

    # similarity = x @ pattern.T as one merged (TB*S, H) x (H, P) MXU matmul.
    # S is padded to a multiple of 8 in the wrapper so the reshape is
    # tile-aligned (no relayout copy).
    sim = lax.dot_general(
        x.reshape(TB * S, H), pat_ref[...],
        (((1,), (1,)), ((), ())),
        preferred_element_type=jnp.float32).reshape(TB, S, P)

    if s_valid != S:
        # Padded sequence rows must not contribute to the softmax.
        row = lax.broadcasted_iota(jnp.int32, (TB, S, P), 1)
        sim = jnp.where(row < s_valid, sim, -jnp.inf)

    # softmax over the sequence axis (PyTorch dim=1)
    m = jnp.max(sim, axis=1, keepdims=True)
    e = jnp.exp(sim - m)
    denom = jnp.sum(e, axis=1, keepdims=True)
    attn = e * pl.reciprocal(denom, approx=False)      # exact: keeps 1e-5 tol

    if attn_transposed:
        # Lane-dense store: put the larger S axis on the 128-lane dimension
        # (XLU transpose is effectively free here; avoids masked stores with
        # only P live lanes).
        attn_ref[...] = jnp.swapaxes(attn, 1, 2).astype(attn_ref.dtype)
    else:
        attn_ref[...] = attn.astype(attn_ref.dtype)

    # out[b,o,h] = sum_p W[o,p] * sum_s attn[b,s,p] * x[b,s,h]
    #            = sum_s (attn @ W.T)[b,s,o] * x[b,s,h]
    # One merged (TB*S, P) x (P, O) matmul, then a batched S-contraction.
    m2 = lax.dot_general(
        attn.reshape(TB * S, P), w_ref[...],
        (((1,), (1,)), ((), ())),
        preferred_element_type=jnp.float32).reshape(TB, S, O)
    out = jnp.einsum("bso,bsh->boh", m2, x,
                     preferred_element_type=jnp.float32)
    out_ref[...] = (out + b_ref[...]).astype(out_ref.dtype)


def _tpu_config():
    """Return (vmem_limit_bytes, tensorcores_per_chip) with safe fallbacks."""
    vmem_cap = None
    try:
        vmem_cap = int(pltpu.get_tpu_info().vmem_capacity_bytes)
    except Exception:
        vmem_cap = None
    kind = ""
    try:
        kind = jax.devices()[0].device_kind.lower()
    except Exception:
        pass
    is_v7 = ("v7" in kind) or ("tpu7" in kind) or ("7x" in kind) or (
        vmem_cap is not None and vmem_cap <= 80 * (1 << 20))
    if is_v7 and (vmem_cap is None or vmem_cap > (64 << 20)):
        vmem_cap = 64 << 20            # v7x: 64 MiB per TensorCore
    if vmem_cap is None:
        vmem_cap = 128 << 20           # v5e / v6e physical VMEM
    vmem_cap = min(vmem_cap, 128 << 20)
    n_cores = 2 if is_v7 else 1
    # Leave ~25% headroom for Mosaic-internal scratch:
    # -> ~96 MiB on v5e/v6e, ~48 MiB on v7x.
    vmem_limit = int(vmem_cap * 3 // 4)
    return vmem_limit, n_cores


def _pick_batch_block(B, S, H, P, O, vmem_limit, n_cores):
    """Largest per-step batch block that honestly fits the VMEM budget.

    Accounts for Pallas double-buffering of every pipelined block (2x), the
    f32 temporaries live inside the kernel, resident constants, and (8,128)
    tile padding of every VMEM buffer.
    """
    const_bytes = 2 * (_tile_bytes(P, H) + _tile_bytes(O, P) + _tile_bytes(O, 1))
    per_tb = (
        2 * (_tile_bytes(S, H) + _tile_bytes(O, H) + _tile_bytes(P, S))  # io blocks (2x)
        + 2 * _tile_bytes(S, H)       # x value + merged (TB*S, H) view
        + 2 * _tile_bytes(S, P)       # sim, exp
        + _tile_bytes(P, S)           # transposed attn
        + _tile_bytes(S, O)           # attn @ W.T
        + _tile_bytes(O, H))          # out accumulator
    budget = vmem_limit - const_bytes - (2 << 20)       # misc slack
    tb = max(1, min(B, budget // max(per_tb, 1)))
    steps = -(-B // tb)
    if n_cores >= 2 and B >= 2:
        # Guarantee every TensorCore gets a (balanced) share of the batch grid.
        steps = max(steps, n_cores)
        steps = -(-steps // n_cores) * n_cores
    tb = -(-B // steps)               # shrink block to minimize batch padding
    return int(tb)


def temporal_pattern_attention(x, pattern, w, b):
    """x: (B, S, H) f32. Returns (context (B, 62, H), attn (B, S, P))."""
    B, S, H = x.shape
    P = pattern.shape[0]
    O = w.shape[0]                    # 62

    vmem_limit, n_cores = _tpu_config()
    S_pad = _round_up(S, 8)
    TB = _pick_batch_block(B, S_pad, H, P, O, vmem_limit, n_cores)
    n_steps = -(-B // TB)
    B_pad = n_steps * TB

    x_p = x
    if (B_pad, S_pad) != (B, S):
        x_p = jnp.pad(x, ((0, B_pad - B), (0, S_pad - S), (0, 0)))
    b_col = b.reshape(O, 1)

    attn_transposed = S_pad > P
    attn_shape = (B_pad, P, S_pad) if attn_transposed else (B_pad, S_pad, P)
    attn_block = (TB, P, S_pad) if attn_transposed else (TB, S_pad, P)

    kernel = functools.partial(tpa_kernel, s_valid=S,
                               attn_transposed=attn_transposed)

    cost = pl.CostEstimate(
        flops=2 * B_pad * S_pad * P * (H + O)        # similarity + attn @ W.T
        + 2 * B_pad * S_pad * O * H,                 # S-contraction with x
        transcendentals=B_pad * S_pad * P,           # exp in softmax
        bytes_accessed=4 * (B_pad * S_pad * H + P * H + O * P + O
                            + B_pad * O * H + B_pad * S_pad * P),
    )

    out, attn_store = pl.pallas_call(
        kernel,
        out_shape=(jax.ShapeDtypeStruct((B_pad, O, H), jnp.float32),
                   jax.ShapeDtypeStruct(attn_shape, jnp.float32)),
        grid_spec=pltpu.PrefetchScalarGridSpec(
            num_scalar_prefetch=0,
            grid=(n_steps,),
            in_specs=[
                pl.BlockSpec((TB, S_pad, H), lambda i: (i, 0, 0)),
                # pattern / W / bias are loop-invariant; they total a few KiB,
                # so the extra double-buffer is negligible (pl.Buffered(1)
                # intentionally not used for robustness).
                pl.BlockSpec((P, H), lambda i: (0, 0)),
                pl.BlockSpec((O, P), lambda i: (0, 0)),
                pl.BlockSpec((O, 1), lambda i: (0, 0)),
            ],
            out_specs=[
                pl.BlockSpec((TB, O, H), lambda i: (i, 0, 0)),
                pl.BlockSpec(attn_block, lambda i: (i, 0, 0)),
            ],
        ),
        compiler_params=pltpu.CompilerParams(
            dimension_semantics=("parallel",),
            vmem_limit_bytes=vmem_limit),
        cost_estimate=cost,
    )(x_p, pattern, w, b_col)

    attn = jnp.swapaxes(attn_store, 1, 2) if attn_transposed else attn_store
    return out[:B], attn[:B, :S, :]


def reference(x, pattern, w, b):
    sim = jnp.einsum("bsh,ph->bsp", x, pattern)
    attn = jax.nn.softmax(sim, axis=1)
    ctx = jnp.einsum("bsp,bsh->bph", attn, x)             # (B, P, H)
    out = jnp.einsum("op,bph->boh", w, ctx) + b[None, :, None]
    return out, attn


if __name__ == "__main__":
    B, S, H, P = 2, 8, 32, 4
    key = jax.random.PRNGKey(0)
    k1, k2, k3, k4 = jax.random.split(key, 4)

    x = jax.random.normal(k1, (B, S, H), dtype=jnp.float32)
    # nn.Parameter(torch.randn(P, H))
    pattern = jax.random.normal(k2, (P, H), dtype=jnp.float32)
    # nn.Linear(P, 62): weight (62, P), bias (62,), uniform(-1/sqrt(P), 1/sqrt(P))
    bound = 1.0 / (P ** 0.5)
    w = jax.random.uniform(k3, (62, P), dtype=jnp.float32, minval=-bound, maxval=bound)
    b = jax.random.uniform(k4, (62,), dtype=jnp.float32, minval=-bound, maxval=bound)

    ctx_out, attn_out = temporal_pattern_attention(x, pattern, w, b)
    jax.block_until_ready((ctx_out, attn_out))

    ctx_exp, attn_exp = reference(x, pattern, w, b)
    assert ctx_out.shape == (B, 62, H) and attn_out.shape == (B, S, P)
    assert jnp.allclose(ctx_out, ctx_exp, atol=1e-5, rtol=1e-5)
    assert jnp.allclose(attn_out, attn_exp, atol=1e-5, rtol=1e-5)

    print("KERNEL_OK")
</pallas_src>

<mosaic_0001>
module attributes {stable_mosaic.version = 11 : i64} {
  func.func @tpa_kernel(%arg0: i32, %arg1: memref<2x8x32xf32, #tpu.memory_space<vmem>>, %arg2: memref<4x32xf32, #tpu.memory_space<vmem>>, %arg3: memref<62x4xf32, #tpu.memory_space<vmem>>, %arg4: memref<62x1xf32, #tpu.memory_space<vmem>>, %arg5: memref<2x62x32xf32, #tpu.memory_space<vmem>>, %arg6: memref<2x4x8xf32, #tpu.memory_space<vmem>>) attributes {dimension_semantics = [#tpu.dimension_semantics<parallel>], iteration_bounds = array<i64: 1>, scalar_prefetch = 0 : i64, scratch_operands = 0 : i64, tpu.core_type = #tpu.core_type<tc>, window_params = [{transform_indices = @transform_0, window_bounds = array<i64: 2, 8, 32>}, {pipeline_mode = #tpu.pipeline_mode<synchronous>, transform_indices = @transform_1, window_bounds = array<i64: 4, 32>}, {pipeline_mode = #tpu.pipeline_mode<synchronous>, transform_indices = @transform_2, window_bounds = array<i64: 62, 4>}, {pipeline_mode = #tpu.pipeline_mode<synchronous>, transform_indices = @transform_3, window_bounds = array<i64: 62, 1>}, {transform_indices = @transform_4, window_bounds = array<i64: 2, 62, 32>}, {transform_indices = @transform_5, window_bounds = array<i64: 2, 4, 8>}]} {
    %c0 = arith.constant 0 : index
    %c0_0 = arith.constant 0 : index
    %c0_1 = arith.constant 0 : index
    %0 = vector.load %arg1[%c0, %c0_0, %c0_1] : memref<2x8x32xf32, #tpu.memory_space<vmem>>, vector<2x8x32xf32>
    %1 = vector.shape_cast %0 : vector<2x8x32xf32> to vector<16x32xf32>
    %c0_2 = arith.constant 0 : index
    %c0_3 = arith.constant 0 : index
    %2 = vector.load %arg2[%c0_2, %c0_3] : memref<4x32xf32, #tpu.memory_space<vmem>>, vector<4x32xf32>
    %cst = arith.constant dense<0.000000e+00> : vector<16x4xf32>
    %3 = tpu.matmul %1, %2, %cst {dimension_numbers = #tpu.dot_dimension_numbers<[1], [1], [0], [0], [0, 0, 1, 0], [], []>} : vector<16x32xf32>, vector<4x32xf32>, vector<16x4xf32> -> vector<16x4xf32>
    %4 = vector.shape_cast %3 : vector<16x4xf32> to vector<2x8x4xf32>
    %cst_4 = arith.constant dense<0xFF800000> : vector<2x4xf32>
    %5 = vector.multi_reduction <maximumf>, %4, %cst_4 [1] : vector<2x8x4xf32> to vector<2x4xf32>
    %6 = vector.shape_cast %5 : vector<2x4xf32> to vector<2x1x4xf32>
    %7 = vector.broadcast %6 : vector<2x1x4xf32> to vector<2x8x4xf32>
    %8 = arith.subf %4, %7 : vector<2x8x4xf32>
    %9 = math.exp %8 : vector<2x8x4xf32>
    %cst_5 = arith.constant dense<0.000000e+00> : vector<2x4xf32>
    %10 = vector.multi_reduction <add>, %9, %cst_5 [1] : vector<2x8x4xf32> to vector<2x4xf32>
    %11 = vector.shape_cast %10 : vector<2x4xf32> to vector<2x1x4xf32>
    %12 = tpu.reciprocal %11 : vector<2x1x4xf32> -> vector<2x1x4xf32>
    %13 = vector.broadcast %12 : vector<2x1x4xf32> to vector<2x8x4xf32>
    %14 = arith.mulf %9, %13 : vector<2x8x4xf32>
    %15 = tpu.transpose %14, [0, 2, 1] : vector<2x8x4xf32> -> vector<2x4x8xf32>
    %c0_6 = arith.constant 0 : index
    %c0_7 = arith.constant 0 : index
    %c0_8 = arith.constant 0 : index
    %16 = vector.load %arg6[%c0_6, %c0_7, %c0_8] : memref<2x4x8xf32, #tpu.memory_space<vmem>>, vector<2x4x8xf32>
    tpu.vector_store %arg6[%c0_6, %c0_7, %c0_8], %15 {strides = array<i32>} : memref<2x4x8xf32, #tpu.memory_space<vmem>>, vector<2x4x8xf32>,
    %17 = vector.shape_cast %14 : vector<2x8x4xf32> to vector<16x4xf32>
    %c0_9 = arith.constant 0 : index
    %c0_10 = arith.constant 0 : index
    %18 = vector.load %arg3[%c0_9, %c0_10] : memref<62x4xf32, #tpu.memory_space<vmem>>, vector<62x4xf32>
    %cst_11 = arith.constant dense<0.000000e+00> : vector<16x62xf32>
    %19 = tpu.matmul %17, %18, %cst_11 {dimension_numbers = #tpu.dot_dimension_numbers<[1], [1], [0], [0], [0, 0, 1, 0], [], []>} : vector<16x4xf32>, vector<62x4xf32>, vector<16x62xf32> -> vector<16x62xf32>
    %20 = vector.shape_cast %19 : vector<16x62xf32> to vector<2x8x62xf32>
    "tpu.trace_start"() <{level = 10 : i32, message = "bso,bsh->boh"}> : () -> ()
    %cst_12 = arith.constant dense<0.000000e+00> : vector<2x62x32xf32>
    %21 = tpu.matmul %20, %0, %cst_12 {dimension_numbers = #tpu.dot_dimension_numbers<[1], [1], [2], [2], [0, 0, 0, 2, 1, 2], [0], [0]>} : vector<2x8x62xf32>, vector<2x8x32xf32>, vector<2x62x32xf32> -> vector<2x62x32xf32>
    "tpu.trace_stop"() : () -> ()
    %c0_13 = arith.constant 0 : index
    %c0_14 = arith.constant 0 : index
    %22 = vector.load %arg4[%c0_13, %c0_14] : memref<62x1xf32, #tpu.memory_space<vmem>>, vector<62x1xf32>
    %23 = vector.shape_cast %22 : vector<62x1xf32> to vector<1x62x1xf32>
    %24 = vector.broadcast %23 : vector<1x62x1xf32> to vector<2x62x32xf32>
    %25 = arith.addf %21, %24 : vector<2x62x32xf32>
    %c0_15 = arith.constant 0 : index
    %c0_16 = arith.constant 0 : index
    %c0_17 = arith.constant 0 : index
    %26 = vector.load %arg5[%c0_15, %c0_16, %c0_17] : memref<2x62x32xf32, #tpu.memory_space<vmem>>, vector<2x62x32xf32>
    tpu.vector_store %arg5[%c0_15, %c0_16, %c0_17], %25 {strides = array<i32>} : memref<2x62x32xf32, #tpu.memory_space<vmem>>, vector<2x62x32xf32>,
    return
  }
  func.func @transform_0(%arg0: i32) -> (i32, i32, i32) {
    %c0_i32 = arith.constant 0 : i32
    %c0_i32_0 = arith.constant 0 : i32
    %c0_i32_1 = arith.constant 0 : i32
    return %arg0, %c0_i32, %c0_i32_0 : i32, i32, i32
  }
  func.func @transform_1(%arg0: i32) -> (i32, i32) {
    %c0_i32 = arith.constant 0 : i32
    %c0_i32_0 = arith.constant 0 : i32
    %c0_i32_1 = arith.constant 0 : i32
    return %c0_i32, %c0_i32_0 : i32, i32
  }
  func.func @transform_2(%arg0: i32) -> (i32, i32) {
    %c0_i32 = arith.constant 0 : i32
    %c0_i32_0 = arith.constant 0 : i32
    %c0_i32_1 = arith.constant 0 : i32
    return %c0_i32, %c0_i32_0 : i32, i32
  }
  func.func @transform_3(%arg0: i32) -> (i32, i32) {
    %c0_i32 = arith.constant 0 : i32
    %c0_i32_0 = arith.constant 0 : i32
    %c0_i32_1 = arith.constant 0 : i32
    return %c0_i32, %c0_i32_0 : i32, i32
  }
  func.func @transform_4(%arg0: i32) -> (i32, i32, i32) {
    %c0_i32 = arith.constant 0 : i32
    %c0_i32_0 = arith.constant 0 : i32
    %c0_i32_1 = arith.constant 0 : i32
    return %arg0, %c0_i32, %c0_i32_0 : i32, i32, i32
  }
  func.func @transform_5(%arg0: i32) -> (i32, i32, i32) {
    %c0_i32 = arith.constant 0 : i32
    %c0_i32_0 = arith.constant 0 : i32
    %c0_i32_1 = arith.constant 0 : i32
    return %arg0, %c0_i32, %c0_i32_0 : i32, i32, i32
  }
}

</mosaic_0001>

<bundles_post_ra>
// kernel: tpu_custom_call.1
= control target key start
LH: loop header
LB: loop body
LE: loop exit
PB: predicated region body
PF: predicated region fallthrough
CT: control target
= control target key end

     0   :  { %11 = vsyncpa [#allocation3], 0  ;;  %s1334_s0 = inlined_call_operand.hbm [shape: f32[2,8,32], index: 0, kind: input, shape index: {}]   ;;  %s1335_s1 = inlined_call_operand.hbm [shape: f32[4,32], index: 1, kind: input, shape index: {}]   ;;  %s1336_s2 = inlined_call_operand.hbm [shape: f32[62,4], index: 2, kind: input, shape index: {}]   ;;  %s1337_s3 = inlined_call_operand.hbm [shape: f32[62,1], index: 3, kind: input, shape index: {}]   ;;  %s1338_s4 = inlined_call_operand.hbm [shape: f32[2,62,32], index: 4, kind: output, shape index: {0}]   ;;  %s1339_s5 = inlined_call_operand.hbm [shape: f32[2,4,8], index: 5, kind: output, shape index: {1}]  }
   0x1   :  { %12 = vsyncpa [#allocation6], 0 }
   0x2   :  { %13 = vsyncpa [#allocation9], 0 }
   0x3   :  { %14 = vsyncpa [#allocation4], 0 }
   0x4   :  { %15 = vsyncpa [#allocation12], 0  ;;  %s1104_s18 = smov [#allocation5]   ;;  %s1105_s20 = smov [#allocation2]  }
   0x5   :  { %s34_s19 = sshll.u32 %s1104_s18, 4  ;;  %s21_s21 = sshll.u32 %s1105_s20, 4  ;;  %s35_s19 = int_to_ptr.vmem [resolvable:$true] %s34_s19  ;;  %s1145_s21 = int_to_ptr.vmem [resolvable:$true] %s21_s21 }
   0x6   :  { %s962_s24 = scalar_lea.hbm %s1335_s1, 64 }
   0x7   :  { %p963_p0 = scmp.ne.s32.totalorder %s1335_s1, %s962_s24  ;;  %p966_p1 = scmp.lt.u32.totalorder %s962_s24, %s1335_s1 }
   0x9   :  { %p968_p2 = pnand %p966_p1, %p963_p0 }
   0xb   :  { %971 = shalt.err (!%p968_p2)
}
   0xc   :  { %s972_s29 = scalar_lea.vmem %s35_s19, 64  ;;  %p977_p4 = scmp.lt.s32.totalorder %s35_s19, %s35_s19 }
   0xd   :  { %p973_p3 = scmp.ne.s32.totalorder %s35_s19, %s972_s29  ;;  %p978_p5 = scmp.lt.s32.totalorder %s972_s29, %s972_s29 }
   0xf   :  { %p979_p6 = por %p978_p5, %p977_p4 }
  0x11   :  { %p980_p7 = pnand %p979_p6, %p973_p3 }
  0x13   :  { %983 = shalt.err (!%p980_p7)
}
  0x14   :  { %37 = dma.hbm_to_vmem [thread:$0]  %s1335_s1, 64, %s35_s19, [#allocation6]  }
  0x15   :  { %s984_s9 = scalar_lea.hbm %s1334_s0, 256 }
  0x16   :  { %p985_p8 = scmp.ne.s32.totalorder %s1334_s0, %s984_s9  ;;  %p988_p9 = scmp.lt.u32.totalorder %s984_s9, %s1334_s0 }
  0x18   :  { %p990_p10 = pnand %p988_p9, %p985_p8 }
  0x1a   :  { %993 = shalt.err (!%p990_p10)
}
  0x1b   :  { %s994_s14 = scalar_lea.vmem %s1145_s21, 256  ;;  %p999_p12 = scmp.lt.s32.totalorder %s1145_s21, %s1145_s21 }
  0x1c   :  { %p995_p11 = scmp.ne.s32.totalorder %s1145_s21, %s994_s14  ;;  %p1000_p13 = scmp.lt.s32.totalorder %s994_s14, %s994_s14 }
  0x1e   :  { %p1001_p0 = por %p1000_p13, %p999_p12 }
  0x20   :  { %p1002_p1 = pnand %p1001_p0, %p995_p11 }
  0x22   :  { %1005 = shalt.err (!%p1002_p1)
}
  0x23   :  { %s1106_s1 = smov 128   ;;  %s1107_s15 = smov 8  }
  0x24   :  { %27 = dma.hbm_to_vmem [thread:$0]  %s1334_s0, 256, %s1145_s21, [#allocation3], %s1106_s1, %s1106_s1, %s1107_s15  }
  0x25   :  { %s1108_s18 = smov [#allocation7]   ;;  %s1109_s20 = smov [#allocation8]  }
  0x26   :  { %s43_s19 = sshll.u32 %s1108_s18, 4  ;;  %s55_s22 = sshll.u32 %s1109_s20, 4  ;;  %s44_s19 = int_to_ptr.vmem [resolvable:$true] %s43_s19  ;;  %s1179_s22 = int_to_ptr.vmem [resolvable:$true] %s55_s22 }
  0x27   :  { %s1006_s25 = scalar_lea.hbm %s1336_s2, 1024 }
  0x28   :  { %p1007_p2 = scmp.ne.s32.totalorder %s1336_s2, %s1006_s25  ;;  %p1010_p3 = scmp.lt.u32.totalorder %s1006_s25, %s1336_s2 }
  0x2a   :  { %p1012_p4 = pnand %p1010_p3, %p1007_p2 }
  0x2c   :  { %1015 = shalt.err (!%p1012_p4)
}
  0x2d   :  { %s1016_s0 = scalar_lea.vmem %s44_s19, 1024  ;;  %p1021_p6 = scmp.lt.s32.totalorder %s44_s19, %s44_s19 }
  0x2e   :  { %p1017_p5 = scmp.ne.s32.totalorder %s44_s19, %s1016_s0  ;;  %p1022_p7 = scmp.lt.s32.totalorder %s1016_s0, %s1016_s0 }
  0x30   :  { %p1023_p8 = por %p1022_p7, %p1021_p6 }
  0x32   :  { %p1024_p9 = pnand %p1023_p8, %p1017_p5 }
  0x34   :  { %1027 = shalt.err (!%p1024_p9)
}
  0x35   :  { %49 = dma.hbm_to_vmem [thread:$0]  %s1336_s2, 1024, %s44_s19, [#allocation6], %s1106_s1, %s1106_s1, %s1107_s15  }
  0x36   :  { %s1028_s8 = scalar_lea.hbm %s1337_s3, 1024 }
  0x37   :  { %p1029_p10 = scmp.ne.s32.totalorder %s1337_s3, %s1028_s8  ;;  %p1032_p11 = scmp.lt.u32.totalorder %s1028_s8, %s1337_s3 }
  0x39   :  { %p1034_p12 = pnand %p1032_p11, %p1029_p10 }
  0x3b   :  { %1037 = shalt.err (!%p1034_p12)
}
  0x3c   :  { %s1038_s13 = scalar_lea.vmem %s1179_s22, 1024  ;;  %p1043_p0 = scmp.lt.s32.totalorder %s1179_s22, %s1179_s22 }
  0x3d   :  { %p1039_p13 = scmp.ne.s32.totalorder %s1179_s22, %s1038_s13  ;;  %p1044_p1 = scmp.lt.s32.totalorder %s1038_s13, %s1038_s13 }
  0x3f   :  { %p1045_p2 = por %p1044_p1, %p1043_p0 }
  0x41   :  { %p1046_p3 = pnand %p1045_p2, %p1039_p13 }
  0x43   :  { %1049 = shalt.err (!%p1046_p3)
}
  0x44   :  { %61 = dma.hbm_to_vmem [thread:$0]  %s1337_s3, 1024, %s1179_s22, [#allocation9], %s1106_s1, %s1106_s1, %s1107_s15  }
  0x45   :  { %1094 = dma.done.wait [#allocation3], 256  }
  0x46   :  { %1095 = vsyncadd [#allocation3], 4294967040 }
  0x47   :  { %1096 = dma.done.wait [#allocation6], 1088  }
  0x48   :  { %1097 = vsyncadd [#allocation6], 4294966208 }
  0x49   :  { %1098 = dma.done.wait [#allocation9], 1024  }
  0x4a   :  { %1099 = vsyncadd [#allocation9], 4294966272  ;;  %v1110_v0 = vmov 0   ;;  %vm77_vm0 = vcmask 261120   ;;  %v76_v1 = vld [vmem:[#allocation5] sm:$0xf] }
  0x4b   :  { %952 = vset.pattern.permute.xlu1 %v1110_v0  ;;  %v74_v2 = vld [vmem:[#allocation2] sm:$0xff]  ;;  %864 = vmatprep.subr.msk.mxu0 %vm77_vm0, %v76_v1  ;;  %v381_v3 = vld [vmem:[#allocation8] sm:$0xff]  ;;  %v1220_v4 = vld [vmem:[#allocation2 + $0x8] sm:$0xff]  ;;  %vm162_vm1 = vcmask 31744   ;;  %vm461_vm3 = vcmask 64512   ;;  %vm265_vm4 = vcmask 60416  }
  0x4c   :  { %866 = vmatprep.mubr.msk.f32.mxu0 %vm77_vm0, %v74_v2  ;;  %865 = vmatpush3.xpose.msk.msra.mxu0 %vm77_vm0, %v76_v1  ;;  %v382_v5 = vld [vmem:[#allocation8 + $0x8] sm:$0xff]  ;;  %v383_v6 = vld [vmem:[#allocation8 + $0x10] sm:$0xff]  ;;  %v384_v7 = vld [vmem:[#allocation8 + $0x18] sm:$0xff]  ;;  %s1111_s3 = smov [#allocation11]  }
  0x4d   :  { %391 = vperm.xlu1 %952, %v381_v3   ;;  %888 = vmatprep.subr.mxu0 %v74_v2  ;;  %v385_v8 = vld [vmem:[#allocation8 + $0x20] sm:$0xff]  ;;  %v386_v9 = vld [vmem:[#allocation8 + $0x28] sm:$0xff]  ;;  %v387_v10 = vld [vmem:[#allocation8 + $0x30] sm:$0xff]  ;;  %s786_s16 = sshll.u32 %s1111_s3, 4  ;;  %s787_s16 = int_to_ptr.vmem [resolvable:$true] %s786_s16 }
  0x4e   :  { %v388_v11 = vld [vmem:[#allocation8 + $0x38] sm:$0x3f]  ;;  %v268_v12 = vld [vmem:[#allocation7] sm:$0xff]  ;;  %v269_v13 = vld [vmem:[#allocation7 + $0x8] sm:$0xff]  ;;  %s1050_s17 = scalar_lea.vmem %s787_s16, 128  ;;  %p1055_p5 = scmp.lt.s32.totalorder %s787_s16, %s787_s16 }
  0x4f   :  { %867 = vmatmul.mubr.msk.f32.vlgmr.msra.gmra.mrb[0].mxu0 %vm77_vm0, %v1220_v4  ;;  %v916_v14 = vpack.c.bf16 %v269_v13, %v268_v12  ;;  %vm1227_vm2 = vmpackc.low %vm162_vm1, %vm162_vm1  ;;  %v270_v16 = vld [vmem:[#allocation7 + $0x10] sm:$0xff]  ;;  %v271_v17 = vld [vmem:[#allocation7 + $0x18] sm:$0xff]  ;;  %p1051_p4 = scmp.ne.s32.totalorder %s787_s16, %s1050_s17  ;;  %p1056_p6 = scmp.lt.s32.totalorder %s1050_s17, %s1050_s17 }
  0x50   :  { %889 = vmatpush3.msra.mxu0 %v74_v2  ;;  %v922_v18 = vpack.c.bf16 %v271_v17, %v270_v16  ;;  %v272_v19 = vld [vmem:[#allocation7 + $0x20] sm:$0xff]  ;;  %v273_v20 = vld [vmem:[#allocation7 + $0x28] sm:$0xff]  ;;  %v274_v22 = vld [vmem:[#allocation7 + $0x30] sm:$0xff] }
  0x51   :  { %396 = vperm.xlu1 %952, %v382_v5   ;;  %902 = vmatprep.subr.mxu0 %v1220_v4  ;;  %v928_v21 = vpack.c.bf16 %v273_v20, %v272_v19  ;;  %v275_v23 = vld [vmem:[#allocation7 + $0x38] sm:$0x3f]  ;;  %p1057_p7 = por %p1056_p6, %p1055_p5 }
  0x52   :  { %918 = vmatprep.subr.msk.bf16.mxu1 %vm1227_vm2, %v916_v14  ;;  %v934_v24 = vpack.c.bf16 %v275_v23, %v274_v22 }
  0x53   :  { %921 = vmatpush3.bf16.xpose.msk.msra.mxu1 %vm1227_vm2, %v916_v14  ;;  %p1058_p8 = pnand %p1057_p7, %p1051_p4 }
  0x54   :  { %924 = vmatprep.subr.msk.bf16.mxu1 %vm1227_vm2, %v922_v18 }
  0x55   :  { %401 = vperm.xlu1 %952, %v383_v6  }
  0x59   :  { %406 = vperm.xlu1 %952, %v384_v7  }
  0x5b   :  { %927 = vmatpush3.bf16.xpose.msk.msra.mxu1 %vm1227_vm2, %v922_v18 }
  0x5c   :  { %930 = vmatprep.subr.msk.bf16.mxu1 %vm1227_vm2, %v928_v21 }
  0x5d   :  { %411 = vperm.xlu1 %952, %v385_v8  }
  0x61   :  { %416 = vperm.xlu1 %952, %v386_v9  }
  0x63   :  { %933 = vmatpush3.bf16.xpose.msk.msra.mxu1 %vm1227_vm2, %v928_v21 }
  0x64   :  { %936 = vmatprep.subr.msk.bf16.mxu1 %vm1227_vm2, %v934_v24 }
  0x65   :  { %421 = vperm.xlu1 %952, %v387_v10  }
  0x69   :  { %426 = vperm.xlu1 %952, %v388_v11  }
  0x6b   :  { %939 = vmatpush3.bf16.xpose.msk.msra.mxu1 %vm1227_vm2, %v934_v24 }
  0xcc   :  { %v392_v19 = vpop.permute.xlu1 %391 }
  0xd0   :  { %v397_v20 = vpop.permute.xlu1 %396 }
  0xd4   :  { %v1271_v21 = vpop.permute.xlu1 %401 }
  0xd8   :  { %v407_v22 = vpop.permute.xlu1 %406 }
  0xdc   :  { %v1273_v23 = vpop.permute.xlu1 %411 }
  0xe0   :  { %v1275_v24 = vpop.permute.xlu1 %416 }
 0x122   :  { %v868_v25 = vpop.f32.mrb[0].mxu0 }
 0x123   :  { %v170_v26 = vsel %vm162_vm1, %v868_v25, -inf  ;;  %v153_v27 = vpop.f32.mrb[1].mxu0 }
 0x124   :  { %v171_v28 = vrot.slane %v170_v26, 4  ;;  %v163_v29 = vsel %vm162_vm1, %v153_v27, -inf }
 0x125   :  { %v164_v30 = vrot.slane %v163_v29, 4 }
 0x126   :  { %v172_v31 = vmax.f32 %v170_v26, %v171_v28 }
 0x127   :  { %v165_v32 = vmax.f32 %v163_v29, %v164_v30 }
 0x128   :  { %v173_v33 = vrot.slane %v172_v31, 2 }
 0x129   :  { %v166_v34 = vrot.slane %v165_v32, 2 }
 0x12a   :  { %v174_v35 = vmax.f32 %v172_v31, %v173_v33 }
 0x12b   :  { %v167_v36 = vmax.f32 %v165_v32, %v166_v34 }
 0x12c   :  { %v175_v37 = vrot.slane %v174_v35, 1 }
 0x12d   :  { %v168_v38 = vrot.slane %v167_v36, 1 }
 0x12e   :  { %v176_v39 = vmax.f32 %v174_v35, %v175_v37 }
 0x12f   :  { %v169_v40 = vmax.f32 %v167_v36, %v168_v38 }
 0x130   :  { %v178_v41 = vsub.f32 %v868_v25, %v176_v39  ;;  %v1277_v25 = vpop.permute.xlu1 %421 }
 0x131   :  { %v177_v42 = vsub.f32 %v153_v27, %v169_v40 }
 0x132   :  { %v181_v43 = vmul.f32 1.442695, %v178_v41 }
 0x133   :  { %v179_v44 = vmul.f32 1.442695, %v177_v42 }
 0x134   :  { %954 = vpow2.f32 %v181_v43  ;;  %v1279_v26 = vpop.permute.xlu1 %426 }
 0x135   :  { %956 = vpow2.f32 %v179_v44 }
 0x13e   :  { %v955_v45 = vpop.eup %954 }
 0x13f   :  { %v957_v46 = vpop.eup %956  ;;  %v190_v47 = vsel %vm162_vm1, %v955_v45, 0.0 }
 0x140   :  { %v191_v48 = vrot.slane %v190_v47, 4  ;;  %v183_v49 = vsel %vm162_vm1, %v957_v46, 0.0 }
 0x141   :  { %v184_v50 = vrot.slane %v183_v49, 4 }
 0x142   :  { %v192_v51 = vadd.f32 %v191_v48, %v190_v47 }
 0x143   :  { %v185_v52 = vadd.f32 %v184_v50, %v183_v49 }
 0x144   :  { %v193_v53 = vrot.slane %v192_v51, 2 }
 0x145   :  { %v186_v54 = vrot.slane %v185_v52, 2 }
 0x146   :  { %v194_v55 = vadd.f32 %v193_v53, %v192_v51 }
 0x147   :  { %v187_v56 = vadd.f32 %v186_v54, %v185_v52 }
 0x148   :  { %v195_v57 = vrot.slane %v194_v55, 1 }
 0x149   :  { %v188_v58 = vrot.slane %v187_v56, 1 }
 0x14a   :  { %v196_v59 = vadd.f32 %v195_v57, %v194_v55 }
 0x14b   :  { %v189_v60 = vadd.f32 %v188_v58, %v187_v56 }
 0x14c   :  { %958 = vrcp.f32 %v196_v59 }
 0x14d   :  { %960 = vrcp.f32 %v189_v60 }
 0x156   :  { %v959_v61 = vpop.eup %958 }
 0x157   :  { %v961_v62 = vpop.eup %960  ;;  %v200_v1 = vmul.f32 %v959_v61, %v955_v45 }
 0x158   :  { %v199_v63 = vmul.f32 %v961_v62, %v957_v46 }
 0x15a   :  { %201 = vxpose.xlu1.b32.start.end [1/1] (short) (narrow) %v199_v63, 8  ;;  %885 = vmatprep.mubr.msk.f32.mxu1 %vm162_vm1, %v199_v63 }
 0x15b   :  { %886 = vmatmul.mubr.msk.f32.vlgmr.msra.gmra.mrb[0].mxu1 %vm162_vm1, %v200_v1 }
 0x1da   :  { %v217_v27 = vpop.trf.xlu1 }
 0x1db   :  { %266 = vst.msk [vmem:[#allocation11] sm:$0xf] %vm265_vm4, %v217_v27 }
 0x22e   :  { %v887_v2 = vpop.f32.mrb[0].mxu1 }
 0x22f   :  { %v372_v3 = vpop.f32.mrb[1].mxu1 }
 0x230   :  { %429 = vxpose.xlu0.b32.start.end [1/1] (short) (narrow) %v372_v3, 64 }
 0x24d   :  { %591 = vxpose.xlu0.b32.start.end [1/1] (short) (narrow) %v887_v2, 64 }
 0x26a   :  { %233 = vxpose.xlu0.b32.start.end [1/1] (short) (narrow) %v200_v1, 8 }
 0x293   :  { %953 = vset.pattern.permute.xlu0 %v1110_v0 }
 0x2b0   :  { %v445_v5 = vpop.trf.xlu0 }
 0x2b1   :  { %890 = vmatprep.mubr.msk.f32.mxu0 %vm461_vm3, %v445_v5 }
 0x2b4   :  { %v446_v6 = vpop.trf.xlu0 }
 0x2b5   :  { %891 = vmatmul.mubr.msk.f32.vlgmr.msra.gmra.mrb[2].mxu0 %vm461_vm3, %v446_v6 }
 0x2b6   :  { %903 = vmatpush3.msra.mxu0 %v1220_v4 }
 0x2b8   :  { %v447_v7 = vpop.trf.xlu0 }
 0x2b9   :  { %893 = vmatprep.mubr.msk.f32.mxu0 %vm461_vm3, %v447_v7 }
 0x2bc   :  { %v448_v8 = vpop.trf.xlu0 }
 0x2bd   :  { %894 = vmatmul.mubr.msk.f32.gmra.mrb[4].mxu0 %vm461_vm3, %v448_v8 }
 0x2c0   :  { %v449_v9 = vpop.trf.xlu0 }
 0x2c1   :  { %896 = vmatprep.mubr.msk.f32.mxu0 %vm461_vm3, %v449_v9 }
 0x2c4   :  { %v450_v10 = vpop.trf.xlu0 }
 0x2c5   :  { %897 = vmatmul.mubr.msk.f32.gmra.mrb[6].mxu0 %vm461_vm3, %v450_v10 }
 0x2c8   :  { %v451_v0 = vpop.trf.xlu0 }
 0x2c9   :  { %899 = vmatprep.mubr.msk.f32.mxu0 %vm461_vm3, %v451_v0 }
 0x2cc   :  { %v452_v11 = vpop.trf.xlu0 }
 0x2cd   :  { %900 = vmatmul.mubr.msk.f32.gmra.mrb[8].mxu0 %vm461_vm3, %v452_v11 }
 0x2d0   :  { %v607_v12 = vpop.trf.xlu0 }
 0x2d1   :  { %904 = vmatprep.mubr.msk.f32.mxu0 %vm461_vm3, %v607_v12 }
 0x2d4   :  { %v608_v4 = vpop.trf.xlu0 }
 0x2d5   :  { %905 = vmatmul.mubr.msk.f32.vlgmr.msra.gmra.mrb[10].mxu0 %vm461_vm3, %v608_v4 }
 0x2d8   :  { %v609_v13 = vpop.trf.xlu0 }
 0x2d9   :  { %907 = vmatprep.mubr.msk.f32.mxu0 %vm461_vm3, %v609_v13 }
 0x2dc   :  { %v610_v14 = vpop.trf.xlu0 }
 0x2dd   :  { %908 = vmatmul.mubr.msk.f32.gmra.mrb[12].mxu0 %vm461_vm3, %v610_v14 }
 0x2e0   :  { %v611_v15 = vpop.trf.xlu0 }
 0x2e1   :  { %910 = vmatprep.mubr.msk.f32.mxu0 %vm461_vm3, %v611_v15 }
 0x2e4   :  { %v612_v16 = vpop.trf.xlu0 }
 0x2e5   :  { %911 = vmatmul.mubr.msk.f32.gmra.mrb[14].mxu0 %vm461_vm3, %v612_v16 }
 0x2e8   :  { %v613_v17 = vpop.trf.xlu0 }
 0x2e9   :  { %913 = vmatprep.mubr.msk.f32.mxu0 %vm461_vm3, %v613_v17 }
 0x2ec   :  { %v614_v18 = vpop.trf.xlu0 }
 0x2ed   :  { %914 = vmatmul.mubr.msk.f32.gmra.mrb[16].mxu0 %vm461_vm3, %v614_v18 }
 0x2f0   :  { %v249_v28 = vpop.trf.xlu0 }
 0x2f1   :  { %267 = vst.msk [vmem:[#allocation11 + $0x4] sm:$0xf] %vm265_vm4, %v249_v28 }
 0x2f2   :  { %1061 = shalt.err (!%p1058_p8)
}
 0x2f3   :  { %s1062_s20 = scalar_lea.hbm %s1339_s5, 128 }
 0x2f4   :  { %p1063_p9 = scmp.ne.s32.totalorder %s1339_s5, %s1062_s20  ;;  %p1066_p10 = scmp.lt.u32.totalorder %s1062_s20, %s1339_s5 }
 0x2f6   :  { %p1068_p11 = pnand %p1066_p10, %p1063_p9 }
 0x2f8   :  { %1071 = shalt.err (!%p1068_p11)
}
 0x2f9   :  { %s1112_s26 = smov 64   ;;  %s1113_s27 = smov 4   ;;  %vm759_vm5 = vcmask 259072  }
 0x2fa   :  { %792 = dma.vmem_to_hbm [thread:$0]  %s787_s16, 128, %s1339_s5, [#allocation12], %s1112_s26, %s1112_s26, %s1113_s27  }
 0x2fb   :  { %s1114_s5 = smov [#allocation10]  }
 0x2fc   :  { %s774_s0 = sshll.u32 %s1114_s5, 4  ;;  %s775_s0 = int_to_ptr.vmem [resolvable:$true] %s774_s0 }
 0x2fd   :  { %s1072_s21 = scalar_lea.vmem %s775_s0, 2048  ;;  %p1077_p13 = scmp.lt.s32.totalorder %s775_s0, %s775_s0 }
 0x2fe   :  { %p1073_p12 = scmp.ne.s32.totalorder %s775_s0, %s1072_s21  ;;  %p1078_p0 = scmp.lt.s32.totalorder %s1072_s21, %s1072_s21 }
 0x300   :  { %p1079_p1 = por %p1078_p0, %p1077_p13 }
 0x302   :  { %p1080_p2 = pnand %p1079_p1, %p1073_p12 }
 0x388   :  { %v892_v29 = vpop.f32.mrb[2].mxu0 }
 0x389   :  { %v558_v30 = vadd.f32 %v892_v29, %v397_v20  ;;  %v552_v31 = vpop.f32.mrb[3].mxu0 }
 0x38a   :  { %v553_v32 = vadd.f32 %v552_v31, %v392_v19 }
 0x38b   :  { %753 = vst.msk [vmem:[#allocation10 + $0x8] sm:$0xff] %vm77_vm0, %v558_v30 }
 0x38c   :  { %752 = vst.msk [vmem:[#allocation10] sm:$0xff] %vm77_vm0, %v553_v32 }
 0x390   :  { %v895_v33 = vpop.f32.mrb[4].mxu0 }
 0x391   :  { %v568_v34 = vadd.f32 %v895_v33, %v407_v22  ;;  %v562_v35 = vpop.f32.mrb[5].mxu0 }
 0x392   :  { %v563_v36 = vadd.f32 %v562_v35, %v1271_v21 }
 0x393   :  { %755 = vst.msk [vmem:[#allocation10 + $0x18] sm:$0xff] %vm77_vm0, %v568_v34 }
 0x394   :  { %754 = vst.msk [vmem:[#allocation10 + $0x10] sm:$0xff] %vm77_vm0, %v563_v36 }
 0x398   :  { %v898_v37 = vpop.f32.mrb[6].mxu0 }
 0x399   :  { %v578_v38 = vadd.f32 %v898_v37, %v1275_v24  ;;  %v572_v39 = vpop.f32.mrb[7].mxu0 }
 0x39a   :  { %v573_v40 = vadd.f32 %v572_v39, %v1273_v23 }
 0x39b   :  { %757 = vst.msk [vmem:[#allocation10 + $0x28] sm:$0xff] %vm77_vm0, %v578_v38 }
 0x39c   :  { %756 = vst.msk [vmem:[#allocation10 + $0x20] sm:$0xff] %vm77_vm0, %v573_v40 }
 0x3a0   :  { %v901_v41 = vpop.f32.mrb[8].mxu0 }
 0x3a1   :  { %v588_v42 = vadd.f32 %v901_v41, %v1279_v26  ;;  %v582_v43 = vpop.f32.mrb[9].mxu0 }
 0x3a2   :  { %v583_v44 = vadd.f32 %v582_v43, %v1277_v25 }
 0x3a3   :  { %760 = vst.msk [vmem:[#allocation10 + $0x38] sm:$0x3f] %vm759_vm5, %v588_v42 }
 0x3a4   :  { %758 = vst.msk [vmem:[#allocation10 + $0x30] sm:$0xff] %vm77_vm0, %v583_v44 }
 0x3a8   :  { %v906_v45 = vpop.f32.mrb[10].mxu0 }
 0x3a9   :  { %v719_v46 = vadd.f32 %v906_v45, %v397_v20  ;;  %v713_v47 = vpop.f32.mrb[11].mxu0 }
 0x3aa   :  { %v714_v48 = vadd.f32 %v713_v47, %v392_v19 }
 0x3ab   :  { %762 = vst.msk [vmem:[#allocation10 + $0x48] sm:$0xff] %vm77_vm0, %v719_v46 }
 0x3ac   :  { %761 = vst.msk [vmem:[#allocation10 + $0x40] sm:$0xff] %vm77_vm0, %v714_v48 }
 0x3b0   :  { %v909_v49 = vpop.f32.mrb[12].mxu0 }
 0x3b1   :  { %v729_v50 = vadd.f32 %v909_v49, %v407_v22  ;;  %v723_v51 = vpop.f32.mrb[13].mxu0 }
 0x3b2   :  { %v724_v52 = vadd.f32 %v723_v51, %v1271_v21 }
 0x3b3   :  { %764 = vst.msk [vmem:[#allocation10 + $0x58] sm:$0xff] %vm77_vm0, %v729_v50 }
 0x3b4   :  { %763 = vst.msk [vmem:[#allocation10 + $0x50] sm:$0xff] %vm77_vm0, %v724_v52 }
 0x3b8   :  { %v912_v53 = vpop.f32.mrb[14].mxu0 }
 0x3b9   :  { %v739_v54 = vadd.f32 %v912_v53, %v1275_v24  ;;  %v733_v55 = vpop.f32.mrb[15].mxu0 }
 0x3ba   :  { %v734_v56 = vadd.f32 %v733_v55, %v1273_v23 }
 0x3bb   :  { %766 = vst.msk [vmem:[#allocation10 + $0x68] sm:$0xff] %vm77_vm0, %v739_v54 }
 0x3bc   :  { %765 = vst.msk [vmem:[#allocation10 + $0x60] sm:$0xff] %vm77_vm0, %v734_v56 }
 0x3c0   :  { %v915_v57 = vpop.f32.mrb[16].mxu0 }
 0x3c1   :  { %v749_v58 = vadd.f32 %v915_v57, %v1279_v26  ;;  %v743_v59 = vpop.f32.mrb[17].mxu0 }
 0x3c2   :  { %v744_v60 = vadd.f32 %v743_v59, %v1277_v25 }
 0x3c3   :  { %768 = vst.msk [vmem:[#allocation10 + $0x78] sm:$0x3f] %vm759_vm5, %v749_v58 }
 0x3c4   :  { %767 = vst.msk [vmem:[#allocation10 + $0x70] sm:$0xff] %vm77_vm0, %v744_v60 }
 0x3c5   :  { %1083 = shalt.err (!%p1080_p2)
}
 0x3c6   :  { %s1084_s7 = scalar_lea.hbm %s1338_s4, 2048 }
 0x3c7   :  { %p1085_p3 = scmp.ne.s32.totalorder %s1338_s4, %s1084_s7  ;;  %p1088_p4 = scmp.lt.u32.totalorder %s1084_s7, %s1338_s4 }
 0x3c9   :  { %p1090_p5 = pnand %p1088_p4, %p1085_p3 }
 0x3cb   :  { %1093 = shalt.err (!%p1090_p5)
}
 0x3cc   :  { %780 = dma.vmem_to_hbm [thread:$0]  %s775_s0, 2048, %s1338_s4, [#allocation4], %s1106_s1, %s1106_s1, %s1107_s15  }
 0x3cd   :  { %1100 = dma.done.wait [#allocation4], 2048  }
 0x3ce   :  { %1101 = vsyncadd [#allocation4], 4294965248 }
 0x3cf   :  { %1102 = dma.done.wait [#allocation12], 128  }
 0x3d0   :  { %1103 = vsyncadd [#allocation12], 4294967168 }
 0x3d1   :  { %799 = vsyncpa [#allocation3], 1 }
 0x3d2   :  { %800 = vsyncpa [#allocation6], 1 }
 0x3d3   :  { %801 = vsyncpa [#allocation9], 1 }
 0x3d4   :  { %802 = vsyncpa [#allocation4], 1 }
 0x3d5   :  { %803 = vsyncpa [#allocation12], 1 }

</bundles_post_ra>
